<compile_context>
chip_gen: v6e
topology: v6e:2x2x1
jax: 0.10.0
libtpu: 0.0.40
codegen_flags: <defaults>
</compile_context>

<pallas_src>
import jax
import jax.numpy as jnp
from jax.experimental import pallas as pl
from jax.experimental.pallas import tpu as pltpu


# --------------------------------------------------------------------------- #
# Kernel
# --------------------------------------------------------------------------- #
def _bamba_mlp_kernel(x_ref, wg_ref, wu_ref, wd_ref, o_ref, acc_ref):
    """One (token-tile i, intermediate-tile j) grid step."""
    j = pl.program_id(1)

    @pl.when(j == 0)
    def _():
        acc_ref[...] = jnp.zeros_like(acc_ref)

    x = x_ref[...]                                                       # (tm, H)
    gate = jnp.dot(x, wg_ref[...], preferred_element_type=jnp.float32)   # (tm, tn)
    up = jnp.dot(x, wu_ref[...], preferred_element_type=jnp.float32)     # (tm, tn)
    # SiluAndMul: silu(gate) * up, with the divide kept on the EUP slot.
    sig = pl.reciprocal(1.0 + jnp.exp(-gate), approx=True)
    h = (gate * sig) * up                                                # (tm, tn) f32
    acc_ref[...] += jnp.dot(h.astype(wd_ref.dtype), wd_ref[...],
                            preferred_element_type=jnp.float32)          # (tm, H)

    @pl.when(j == pl.num_programs(1) - 1)
    def _():
        o_ref[...] = acc_ref[...].astype(o_ref.dtype)


# --------------------------------------------------------------------------- #
# Tiling / config helpers
# --------------------------------------------------------------------------- #
def _round_up(x, m):
    return ((x + m - 1) // m) * m


def _vmem_capacity_bytes():
    """Per-core VMEM capacity; conservative fallback if the query fails."""
    try:
        info = pltpu.get_tpu_info()
        for attr in ("vmem_capacity_bytes", "vmem_size_bytes", "vmem_bytes"):
            cap = getattr(info, attr, None)
            if cap:
                return int(cap)
    except Exception:
        pass
    return 64 * 1024 * 1024  # assume v7x-class per-core VMEM (safe everywhere)


def _select_config(T, H, x_dtype, w_dtype):
    """Generation-aware (tm, tn_target, vmem_limit_bytes)."""
    vmem_cap = _vmem_capacity_bytes()
    if vmem_cap > 96 * 1024 * 1024:          # v5e / v6e class: 128 MiB VMEM
        tm_prefill, tn_target = 1024, 512
        vmem_limit = 112 * 1024 * 1024
    else:                                    # v7x class: 64 MiB VMEM per core
        tm_prefill, tn_target = 512, 256
        vmem_limit = min(vmem_cap - 8 * 1024 * 1024, 56 * 1024 * 1024)

    # Decode / small-T: don't pad a handful of tokens up to the prefill tile.
    if T >= tm_prefill:
        tm = tm_prefill                       # multiple of 256 (MXU friendly)
    else:
        tm = min(tm_prefill, _round_up(max(T, 1), 16))

    # Guard: shrink the token tile if the double-buffered footprint won't fit.
    xb = jnp.dtype(x_dtype).itemsize
    wb = jnp.dtype(w_dtype).itemsize

    def footprint(tm_, tn_):
        return (2 * tm_ * H * xb              # x tile (double-buffered)
                + 2 * 2 * H * tn_ * wb        # gate + up column tiles
                + 2 * tn_ * H * wb            # down row tile
                + 2 * tm_ * H * xb            # output tile
                + tm_ * H * 4)                # f32 accumulator scratch

    while tm > 256 and footprint(tm, tn_target) > vmem_limit:
        tm //= 2

    return tm, tn_target, vmem_limit


def _pick_intermediate_tile(I, target):
    """Lane-aligned (multiple of 128) tile dividing the (padded) intermediate."""
    I_pad = _round_up(I, 128)
    target = max(128, min(target, I_pad))
    for t in range((target // 128) * 128, 0, -128):
        if I_pad % t == 0:
            return t, _round_up(I, t)
    return 128, I_pad  # unreachable: 128 always divides I_pad


# --------------------------------------------------------------------------- #
# Wrapper
# --------------------------------------------------------------------------- #
def bamba_mlp(x, w_gate_up, w_down, *, tm=None, tn=None, vmem_limit_bytes=None):
    """x: (T, H); w_gate_up: (H, 2I) merged gate|up; w_down: (I, H) -> (T, H)."""
    T, H = x.shape
    two_I = w_gate_up.shape[1]
    assert two_I % 2 == 0
    I = two_I // 2
    assert w_gate_up.shape == (H, 2 * I)
    assert w_down.shape == (I, H)

    auto_tm, auto_tn, auto_vmem = _select_config(T, H, x.dtype, w_gate_up.dtype)
    tm = auto_tm if tm is None else max(16, _round_up(tm, 16))
    tn_target = auto_tn if tn is None else tn
    vmem_limit_bytes = auto_vmem if vmem_limit_bytes is None else vmem_limit_bytes

    tn, I_pad = _pick_intermediate_tile(I, tn_target)

    # Merged weight stays merged (no wrapper-side split / HBM copy).  Only for
    # irregular I do we zero-pad both halves up to a multiple of tn; padded
    # columns produce silu(0)*0 == 0, so they are numerically inert.
    if I_pad != I:
        pad = I_pad - I
        w_merged = jnp.concatenate(
            [jnp.pad(w_gate_up[:, :I], ((0, 0), (0, pad))),
             jnp.pad(w_gate_up[:, I:], ((0, 0), (0, pad)))], axis=1)
        w_down_p = jnp.pad(w_down, ((0, pad), (0, 0)))
    else:
        w_merged = w_gate_up
        w_down_p = w_down

    # Pad tokens to a multiple of tm; padded rows are zeros -> zero outputs,
    # sliced off at the end.
    T_pad = _round_up(max(T, 1), tm)
    x_p = jnp.pad(x, ((0, T_pad - T), (0, 0))) if T_pad != T else x

    n_j = I_pad // tn
    grid = (T_pad // tm, n_j)
    num_token_tiles = grid[0]

    itemsize = lambda a: jnp.dtype(a.dtype).itemsize
    cost = pl.CostEstimate(
        flops=6 * T * H * I,                  # gate + up + down matmuls
        transcendentals=T * I,                # sigmoid
        bytes_accessed=(x.size * itemsize(x)
                        + (w_gate_up.size * itemsize(w_gate_up)
                           + w_down.size * itemsize(w_down)) * num_token_tiles
                        + T * H * itemsize(x)),
    )

    y_pad = pl.pallas_call(
        _bamba_mlp_kernel,
        out_shape=jax.ShapeDtypeStruct((T_pad, H), x.dtype),
        grid_spec=pltpu.PrefetchScalarGridSpec(
            num_scalar_prefetch=0,
            grid=grid,
            in_specs=[
                pl.BlockSpec((tm, H), lambda i, j: (i, 0)),          # x rows (resident over j)
                pl.BlockSpec((H, tn), lambda i, j: (0, j)),          # gate column tile
                pl.BlockSpec((H, tn), lambda i, j: (0, j + n_j)),    # up column tile (same array)
                pl.BlockSpec((tn, H), lambda i, j: (j, 0)),          # down row tile (K of 2nd mm)
            ],
            out_specs=pl.BlockSpec((tm, H), lambda i, j: (i, 0)),    # constant over j -> resident
            scratch_shapes=[pltpu.VMEM((tm, H), jnp.float32)],       # f32 accumulator
        ),
        compiler_params=pltpu.CompilerParams(
            dimension_semantics=("parallel", "arbitrary"),
            vmem_limit_bytes=vmem_limit_bytes,
        ),
        cost_estimate=cost,
    )(x_p, w_merged, w_merged, w_down_p)

    return y_pad[:T] if T_pad != T else y_pad


# --------------------------------------------------------------------------- #
# Reference + tests
# --------------------------------------------------------------------------- #
def bamba_mlp_reference(x, w_gate_up, w_down):
    gate_up = jnp.dot(x.astype(jnp.float32), w_gate_up.astype(jnp.float32))
    I = w_gate_up.shape[1] // 2
    gate, up = gate_up[:, :I], gate_up[:, I:]
    h = jax.nn.silu(gate) * up
    return jnp.dot(h, w_down.astype(jnp.float32)).astype(x.dtype)


if __name__ == "__main__":
    # --- Test 1: small BambaMLP config (hidden=32, intermediate=64, T=8).
    # Exercises the decode path (tm = round_up(T,16)) and irregular-I padding
    # (I=64 -> padded to 128).
    hidden_size = 32
    intermediate_size = 64
    tokens = 8

    key = jax.random.PRNGKey(0)
    kx, kgu, kd = jax.random.split(key, 3)

    x = jax.random.normal(kx, (tokens, hidden_size), dtype=jnp.float32)
    w_gate_up = jax.random.normal(
        kgu, (hidden_size, 2 * intermediate_size), dtype=jnp.float32) * 0.05
    w_down = jax.random.normal(
        kd, (intermediate_size, hidden_size), dtype=jnp.float32) * 0.05

    y = jax.block_until_ready(bamba_mlp(x, w_gate_up, w_down))
    y_ref = bamba_mlp_reference(x, w_gate_up, w_down)
    assert y.shape == (tokens, hidden_size)
    assert jnp.allclose(y, y_ref, atol=2e-3, rtol=2e-3), "mismatch vs reference (test 1)"

    # --- Test 2: exercises token padding (T=300 -> 512), multiple token tiles
    # and multiple intermediate (reduction) tiles via explicit tm/tn overrides.
    T2, H2, I2 = 300, 128, 512
    k2x, k2gu, k2d = jax.random.split(jax.random.PRNGKey(0), 3)
    x2 = jax.random.normal(k2x, (T2, H2), dtype=jnp.float32)
    wgu2 = jax.random.normal(k2gu, (H2, 2 * I2), dtype=jnp.float32) * 0.05
    wd2 = jax.random.normal(k2d, (I2, H2), dtype=jnp.float32) * 0.05

    y2 = jax.block_until_ready(bamba_mlp(x2, wgu2, wd2, tm=256, tn=128))
    y2_ref = bamba_mlp_reference(x2, wgu2, wd2)
    assert y2.shape == (T2, H2)
    assert jnp.allclose(y2, y2_ref, atol=2e-2, rtol=2e-2), "mismatch vs reference (test 2)"

    print("KERNEL_OK")
</pallas_src>

<mosaic_0001>
module attributes {stable_mosaic.version = 11 : i64} {
  func.func @_bamba_mlp_kernel(%arg0: i32, %arg1: i32, %arg2: memref<16x32xf32, #tpu.memory_space<vmem>>, %arg3: memref<32x128xf32, #tpu.memory_space<vmem>>, %arg4: memref<32x128xf32, #tpu.memory_space<vmem>>, %arg5: memref<128x32xf32, #tpu.memory_space<vmem>>, %arg6: memref<16x32xf32, #tpu.memory_space<vmem>>, %arg7: memref<16x32xf32, #tpu.memory_space<vmem>>) attributes {dimension_semantics = [#tpu.dimension_semantics<parallel>, #tpu.dimension_semantics<arbitrary>], iteration_bounds = array<i64: 1, 1>, scalar_prefetch = 0 : i64, scratch_operands = 1 : i64, tpu.core_type = #tpu.core_type<tc>, window_params = [{transform_indices = @transform_0, window_bounds = array<i64: 16, 32>}, {transform_indices = @transform_1, window_bounds = array<i64: 32, 128>}, {transform_indices = @transform_2, window_bounds = array<i64: 32, 128>}, {transform_indices = @transform_3, window_bounds = array<i64: 128, 32>}, {transform_indices = @transform_4, window_bounds = array<i64: 16, 32>}]} {
    %c0_i32 = arith.constant 0 : i32
    %0 = arith.cmpi eq, %arg1, %c0_i32 : i32
    %1 = arith.extui %0 : i1 to i32
    %c0_i32_0 = arith.constant 0 : i32
    %2 = arith.cmpi ne, %1, %c0_i32_0 : i32
    scf.if %2 {
      %cst_18 = arith.constant 0.000000e+00 : f32
      %24 = vector.broadcast %cst_18 : f32 to vector<16x32xf32>
      %c0_19 = arith.constant 0 : index
      %c0_20 = arith.constant 0 : index
      %25 = vector.load %arg7[%c0_19, %c0_20] : memref<16x32xf32, #tpu.memory_space<vmem>>, vector<16x32xf32>
      tpu.vector_store %arg7[%c0_19, %c0_20], %24 {strides = array<i32>} : memref<16x32xf32, #tpu.memory_space<vmem>>, vector<16x32xf32>,
    } else {
    }
    %c0 = arith.constant 0 : index
    %c0_1 = arith.constant 0 : index
    %3 = vector.load %arg2[%c0, %c0_1] : memref<16x32xf32, #tpu.memory_space<vmem>>, vector<16x32xf32>
    %c0_2 = arith.constant 0 : index
    %c0_3 = arith.constant 0 : index
    %4 = vector.load %arg3[%c0_2, %c0_3] : memref<32x128xf32, #tpu.memory_space<vmem>>, vector<32x128xf32>
    %cst = arith.constant dense<0.000000e+00> : vector<16x128xf32>
    %5 = tpu.matmul %3, %4, %cst {dimension_numbers = #tpu.dot_dimension_numbers<[1], [0], [0], [1], [0, 0, 1, 1], [], []>} : vector<16x32xf32>, vector<32x128xf32>, vector<16x128xf32> -> vector<16x128xf32>
    %c0_4 = arith.constant 0 : index
    %c0_5 = arith.constant 0 : index
    %6 = vector.load %arg4[%c0_4, %c0_5] : memref<32x128xf32, #tpu.memory_space<vmem>>, vector<32x128xf32>
    %cst_6 = arith.constant dense<0.000000e+00> : vector<16x128xf32>
    %7 = tpu.matmul %3, %6, %cst_6 {dimension_numbers = #tpu.dot_dimension_numbers<[1], [0], [0], [1], [0, 0, 1, 1], [], []>} : vector<16x32xf32>, vector<32x128xf32>, vector<16x128xf32> -> vector<16x128xf32>
    %cst_7 = arith.constant 0.000000e+00 : f32
    %8 = vector.broadcast %cst_7 : f32 to vector<16x128xf32>
    %9 = arith.subf %8, %5 : vector<16x128xf32>
    %10 = math.exp %9 : vector<16x128xf32>
    %cst_8 = arith.constant 1.000000e+00 : f32
    %11 = vector.broadcast %cst_8 : f32 to vector<16x128xf32>
    %12 = arith.addf %11, %10 : vector<16x128xf32>
    %13 = tpu.reciprocal %12 {approx = true} : vector<16x128xf32> -> vector<16x128xf32>
    %14 = arith.mulf %5, %13 : vector<16x128xf32>
    %15 = arith.mulf %14, %7 : vector<16x128xf32>
    %c0_9 = arith.constant 0 : index
    %c0_10 = arith.constant 0 : index
    %16 = vector.load %arg7[%c0_9, %c0_10] : memref<16x32xf32, #tpu.memory_space<vmem>>, vector<16x32xf32>
    %c0_11 = arith.constant 0 : index
    %c0_12 = arith.constant 0 : index
    %17 = vector.load %arg5[%c0_11, %c0_12] : memref<128x32xf32, #tpu.memory_space<vmem>>, vector<128x32xf32>
    %cst_13 = arith.constant dense<0.000000e+00> : vector<16x32xf32>
    %18 = tpu.matmul %15, %17, %cst_13 {dimension_numbers = #tpu.dot_dimension_numbers<[1], [0], [0], [1], [0, 0, 1, 1], [], []>} : vector<16x128xf32>, vector<128x32xf32>, vector<16x32xf32> -> vector<16x32xf32>
    %19 = arith.addf %16, %18 : vector<16x32xf32>
    %c0_14 = arith.constant 0 : index
    %c0_15 = arith.constant 0 : index
    %20 = vector.load %arg7[%c0_14, %c0_15] : memref<16x32xf32, #tpu.memory_space<vmem>>, vector<16x32xf32>
    tpu.vector_store %arg7[%c0_14, %c0_15], %19 {strides = array<i32>} : memref<16x32xf32, #tpu.memory_space<vmem>>, vector<16x32xf32>,
    %c0_i32_16 = arith.constant 0 : i32
    %21 = arith.cmpi eq, %arg1, %c0_i32_16 : i32
    %22 = arith.extui %21 : i1 to i32
    %c0_i32_17 = arith.constant 0 : i32
    %23 = arith.cmpi ne, %22, %c0_i32_17 : i32
    scf.if %23 {
      %c0_18 = arith.constant 0 : index
      %c0_19 = arith.constant 0 : index
      %24 = vector.load %arg7[%c0_18, %c0_19] : memref<16x32xf32, #tpu.memory_space<vmem>>, vector<16x32xf32>
      %c0_20 = arith.constant 0 : index
      %c0_21 = arith.constant 0 : index
      %25 = vector.load %arg6[%c0_20, %c0_21] : memref<16x32xf32, #tpu.memory_space<vmem>>, vector<16x32xf32>
      tpu.vector_store %arg6[%c0_20, %c0_21], %24 {strides = array<i32>} : memref<16x32xf32, #tpu.memory_space<vmem>>, vector<16x32xf32>,
    } else {
    }
    return
  }
  func.func @transform_0(%arg0: i32, %arg1: i32) -> (i32, i32) {
    %c0_i32 = arith.constant 0 : i32
    %c0_i32_0 = arith.constant 0 : i32
    return %arg0, %c0_i32 : i32, i32
  }
  func.func @transform_1(%arg0: i32, %arg1: i32) -> (i32, i32) {
    %c0_i32 = arith.constant 0 : i32
    %c0_i32_0 = arith.constant 0 : i32
    return %c0_i32, %arg1 : i32, i32
  }
  func.func @transform_2(%arg0: i32, %arg1: i32) -> (i32, i32) {
    %c1_i32 = arith.constant 1 : i32
    %0 = arith.addi %arg1, %c1_i32 : i32
    %c0_i32 = arith.constant 0 : i32
    %c0_i32_0 = arith.constant 0 : i32
    return %c0_i32, %0 : i32, i32
  }
  func.func @transform_3(%arg0: i32, %arg1: i32) -> (i32, i32) {
    %c0_i32 = arith.constant 0 : i32
    %c0_i32_0 = arith.constant 0 : i32
    return %arg1, %c0_i32 : i32, i32
  }
  func.func @transform_4(%arg0: i32, %arg1: i32) -> (i32, i32) {
    %c0_i32 = arith.constant 0 : i32
    %c0_i32_0 = arith.constant 0 : i32
    return %arg0, %c0_i32 : i32, i32
  }
}

</mosaic_0001>

<bundles_post_ra>
// kernel: tpu_custom_call.1
= control target key start
LH: loop header
LB: loop body
LE: loop exit
PB: predicated region body
PF: predicated region fallthrough
CT: control target
= control target key end

     0   :  { %vm120_vm0 = vcmask 261120   ;;  %s682_s0 = inlined_call_operand.vmem [shape: f32[16,32], index: 0, kind: input, shape index: {}]   ;;  %s683_s1 = inlined_call_operand.vmem [shape: f32[32,256], index: 1, kind: input, shape index: {}]   ;;  %s684_s2 = inlined_call_operand.vmem [shape: f32[32,256], index: 2, kind: input, shape index: {}]   ;;  %s685_s3 = inlined_call_operand.vmem [shape: f32[128,32], index: 3, kind: input, shape index: {}]   ;;  %s686_s4 = inlined_call_operand.hbm [shape: f32[16,32], index: 4, kind: output, shape index: {}]  }
   0x1   :  { %v54_v0 = vld [vmem:[%s683_s1 + $0x30] sm:$0xff]  ;;  %v52_v1 = vld [vmem:[%s683_s1 + $0x20] sm:$0xff] }
   0x2   :  { %471 = vmatprep.subr.mxu1 %v54_v0  ;;  %v123_v2 = vld [vmem:[%s682_s0] sm:$0xff]  ;;  %v50_v3 = vld [vmem:[%s683_s1 + $0x10] sm:$0xff] }
   0x3   :  { %472 = vmatpush3.msra.mxu1 %v54_v0  ;;  %479 = vmatprep.mubr.msk.f32.mxu1 %vm120_vm0, %v123_v2 }
   0x4   :  { %473 = vmatprep.subr.mxu1 %v52_v1 }
   0x5   :  { %9 = vsyncpa [#allocation6], 0  ;;  %474 = vmatpush3.msra.mxu1 %v52_v1  ;;  %v48_v4 = vld [vmem:[%s683_s1] sm:$0xff]  ;;  %v124_v5 = vld [vmem:[%s682_s0 + $0x8] sm:$0xff]  ;;  %v562_v26 = vmov 0.0  }
   0x6   :  { %475 = vmatprep.subr.mxu1 %v50_v3  ;;  %v436_v6 = vld [vmem:[%s684_s2 + $0x38] sm:$0xff]  ;;  %v435_v7 = vld [vmem:[%s684_s2 + $0x28] sm:$0xff]  ;;  %v320_v11 = vld [vmem:[%s685_s3 + $0x70] sm:$0xff]  ;;  %122 = vst.msk [vmem:[#allocation2 + $0x8] sm:$0xff] %vm120_vm0, %v562_v26 }
   0x7   :  { %476 = vmatpush3.msra.mxu1 %v50_v3  ;;  %v434_v8 = vld [vmem:[%s684_s2 + $0x18] sm:$0xff]  ;;  %v433_v9 = vld [vmem:[%s684_s2 + $0x8] sm:$0xff]  ;;  %v318_v13 = vld [vmem:[%s685_s3 + $0x60] sm:$0xff]  ;;  %121 = vst.msk [vmem:[#allocation2] sm:$0xff] %vm120_vm0, %v562_v26 }
   0x8   :  { %477 = vmatprep.subr.mxu1 %v48_v4  ;;  %v321_v10 = vld [vmem:[%s685_s3 + $0x78] sm:$0xff]  ;;  %v319_v12 = vld [vmem:[%s685_s3 + $0x68] sm:$0xff]  ;;  %v316_v15 = vld [vmem:[%s685_s3 + $0x50] sm:$0xff] }
   0x9   :  { %478 = vmatpush3.msra.mxu1 %v48_v4  ;;  %493 = vmatprep.subr.mxu0 %v321_v10  ;;  %v317_v14 = vld [vmem:[%s685_s3 + $0x58] sm:$0xff]  ;;  %v315_v16 = vld [vmem:[%s685_s3 + $0x48] sm:$0xff]  ;;  %v314_v17 = vld [vmem:[%s685_s3 + $0x40] sm:$0xff] }
   0xa   :  { %480 = vmatmul.mubr.msk.f32.vlgmr.msra.gmra.mxu1 %vm120_vm0, %v124_v5  ;;  %482 = vmatprep.subr.mxu1 %v436_v6  ;;  %v313_v18 = vld [vmem:[%s685_s3 + $0x38] sm:$0xff]  ;;  %v312_v19 = vld [vmem:[%s685_s3 + $0x30] sm:$0xff]  ;;  %v311_v20 = vld [vmem:[%s685_s3 + $0x28] sm:$0xff] }
   0xb   :  { %483 = vmatpush3.msra.mxu1 %v436_v6  ;;  %490 = vmatprep.mubr.msk.f32.mxu1 %vm120_vm0, %v123_v2  ;;  %v310_v21 = vld [vmem:[%s685_s3 + $0x20] sm:$0xff]  ;;  %v309_v22 = vld [vmem:[%s685_s3 + $0x18] sm:$0xff]  ;;  %v308_v23 = vld [vmem:[%s685_s3 + $0x10] sm:$0xff] }
   0xc   :  { %484 = vmatprep.subr.mxu1 %v435_v7  ;;  %494 = vmatpush3.msra.mxu0 %v321_v10  ;;  %v307_v24 = vld [vmem:[%s685_s3 + $0x8] sm:$0xff]  ;;  %v306_v25 = vld [vmem:[%s685_s3] sm:$0xff]  ;;  %s563_s3 = smov [#allocation5]  }
   0xd   :  { %485 = vmatpush3.msra.mxu1 %v435_v7  ;;  %495 = vmatprep.subr.mxu0 %v320_v11  ;;  %v305_v45 = vld [vmem:[#allocation2 + $0x8] sm:$0xff]  ;;  %s413_s10 = sshll.u32 %s563_s3, 4  ;;  %s414_s10 = int_to_ptr.vmem [resolvable:$true] %s413_s10 }
   0xe   :  { %486 = vmatprep.subr.mxu1 %v434_v8  ;;  %496 = vmatpush3.msra.mxu0 %v320_v11  ;;  %v304_v47 = vld [vmem:[#allocation2] sm:$0xff]  ;;  %s540_s11 = scalar_lea.vmem %s414_s10, 256  ;;  %p545_p1 = scmp.lt.s32.totalorder %s414_s10, %s414_s10 }
   0xf   :  { %487 = vmatpush3.msra.mxu1 %v434_v8  ;;  %497 = vmatprep.subr.mxu0 %v319_v12  ;;  %p541_p0 = scmp.ne.s32.totalorder %s414_s10, %s540_s11  ;;  %p546_p2 = scmp.lt.s32.totalorder %s540_s11, %s540_s11 }
  0x10   :  { %488 = vmatprep.subr.mxu1 %v433_v9  ;;  %498 = vmatpush3.msra.mxu0 %v319_v12 }
  0x11   :  { %489 = vmatpush3.msra.mxu1 %v433_v9  ;;  %499 = vmatprep.subr.mxu0 %v318_v13  ;;  %p547_p3 = por %p546_p2, %p545_p1 }
  0x12   :  { %491 = vmatmul.mubr.msk.f32.vlgmr.msra.gmra.mxu1 %vm120_vm0, %v124_v5  ;;  %500 = vmatpush3.msra.mxu0 %v318_v13 }
  0x13   :  { %501 = vmatprep.subr.mxu0 %v317_v14  ;;  %p548_p4 = pnand %p547_p3, %p541_p0 }
  0x14   :  { %502 = vmatpush3.msra.mxu0 %v317_v14 }
  0x15   :  { %503 = vmatprep.subr.mxu0 %v316_v15 }
  0x16   :  { %504 = vmatpush3.msra.mxu0 %v316_v15 }
  0x17   :  { %505 = vmatprep.subr.mxu0 %v315_v16 }
  0x18   :  { %506 = vmatpush3.msra.mxu0 %v315_v16 }
  0x19   :  { %507 = vmatprep.subr.mxu0 %v314_v17 }
  0x1a   :  { %508 = vmatpush3.msra.mxu0 %v314_v17 }
  0x1b   :  { %509 = vmatprep.subr.mxu0 %v313_v18 }
  0x1c   :  { %510 = vmatpush3.msra.mxu0 %v313_v18 }
  0x1d   :  { %511 = vmatprep.subr.mxu0 %v312_v19 }
  0x1e   :  { %512 = vmatpush3.msra.mxu0 %v312_v19 }
  0x1f   :  { %513 = vmatprep.subr.mxu0 %v311_v20 }
  0x20   :  { %514 = vmatpush3.msra.mxu0 %v311_v20 }
  0x21   :  { %515 = vmatprep.subr.mxu0 %v310_v21 }
  0x22   :  { %516 = vmatpush3.msra.mxu0 %v310_v21 }
  0x23   :  { %517 = vmatprep.subr.mxu0 %v309_v22 }
  0x24   :  { %518 = vmatpush3.msra.mxu0 %v309_v22 }
  0x25   :  { %519 = vmatprep.subr.mxu0 %v308_v23 }
  0x26   :  { %520 = vmatpush3.msra.mxu0 %v308_v23 }
  0x27   :  { %521 = vmatprep.subr.mxu0 %v307_v24 }
  0x28   :  { %522 = vmatpush3.msra.mxu0 %v307_v24 }
  0x29   :  { %523 = vmatprep.subr.mxu0 %v306_v25 }
  0x2a   :  { %524 = vmatpush3.msra.mxu0 %v306_v25 }
  0xca   :  { %v481_v27 = vpop.f32.mrf.mxu1 }
  0xcb   :  { %v291_v28 = vsub.f32 0.0, %v481_v27 }
  0xcc   :  { %v202_v29 = vpop.f32.mrf.mxu1 }
  0xcd   :  { %v294_v30 = vmul.f32 1.442695, %v291_v28  ;;  %v290_v31 = vsub.f32 0.0, %v202_v29 }
  0xcf   :  { %532 = vpow2.f32 %v294_v30  ;;  %v292_v32 = vmul.f32 1.442695, %v290_v31 }
  0xd1   :  { %534 = vpow2.f32 %v292_v32 }
  0xd2   :  { %v492_v38 = vpop.f32.mrf.mxu1 }
  0xd4   :  { %v281_v42 = vpop.f32.mrf.mxu1 }
  0xdc   :  { %v533_v33 = vpop.eup %532 }
  0xdd   :  { %v297_v34 = vadd.f32 1.0, %v533_v33 }
  0xde   :  { %v535_v35 = vpop.eup %534 }
  0xdf   :  { %536 = vrcp.f32 %v297_v34  ;;  %v296_v36 = vadd.f32 1.0, %v535_v35 }
  0xe1   :  { %538 = vrcp.f32 %v296_v36 }
  0xec   :  { %v537_v37 = vpop.eup %536 }
  0xed   :  { %v301_v40 = vmul.f32 %v537_v37, %v481_v27 }
  0xee   :  { %v539_v39 = vpop.eup %538 }
  0xef   :  { %v300_v41 = vmul.f32 %v539_v39, %v202_v29  ;;  %v303_v44 = vmul.f32 %v492_v38, %v301_v40 }
  0xf1   :  { %v302_v43 = vmul.f32 %v300_v41, %v281_v42 }
  0xf3   :  { %525 = vmatprep.mubr.f32.mxu0 %v302_v43 }
  0xf4   :  { %526 = vmatmul.mubr.f32.vlgmr.msra.gmra.mxu0 %v303_v44 }
 0x1b4   :  { %v527_v46 = vpop.f32.mrf.mxu0 }
 0x1b5   :  { %v398_v48 = vadd.f32 %v527_v46, %v305_v45 }
 0x1b6   :  { %v388_v49 = vpop.f32.mrf.mxu0 }
 0x1b7   :  { %400 = vst.msk [vmem:[#allocation2 + $0x8] sm:$0xff] %vm120_vm0, %v398_v48  ;;  %v397_v50 = vadd.f32 %v388_v49, %v304_v47 }
 0x1b9   :  { %399 = vst.msk [vmem:[#allocation2] sm:$0xff] %vm120_vm0, %v397_v50 }
 0x1be   :  { %v405_v51 = vld [vmem:[#allocation2 + $0x8] sm:$0xff] }
 0x1bf   :  { %407 = vst.msk [vmem:[#allocation5 + $0x8] sm:$0xff] %vm120_vm0, %v405_v51 }
 0x1c0   :  { %v404_v52 = vld [vmem:[#allocation2] sm:$0xff] }
 0x1c1   :  { %406 = vst.msk [vmem:[#allocation5] sm:$0xff] %vm120_vm0, %v404_v52 }
 0x1c2   :  { %551 = shalt.err (!%p548_p4)
}
 0x1c3   :  { %s564_s2 = smov 128   ;;  %s565_s12 = smov 8  }
 0x1c4   :  { %419 = dma.vmem_to_hbm [thread:$0]  %s414_s10, 256, %s686_s4, [#allocation6], %s564_s2, %s564_s2, %s565_s12  }
 0x1c5   :  { %560 = dma.done.wait [#allocation6], 256  }
 0x1c6   :  { %561 = vsyncadd [#allocation6], 4294967040 }
 0x1c7   :  { %423 = vsyncpa [#allocation6], 1 }

</bundles_post_ra>
